<compile_context>
chip_gen: v7x
topology: tpu7x:2x2x1
jax: 0.10.0
libtpu: 0.0.40
codegen_flags: <defaults>
</compile_context>

<pallas_src>
import math

import jax
import jax.numpy as jnp
from jax.experimental import pallas as pl
from jax.experimental.pallas import tpu as pltpu


# ---------------- Pallas kernel ----------------
def token_embedding_kernel(xp_ref, wT_ref, b_ref, o_ref):
    # xp_ref: (SB, GROUP*F)  packed input : lane j*F + f  holds x[r*GROUP + j, f]
    # wT_ref: (F, E)         weight.T     (PyTorch nn.Linear weight is (E, F))
    # b_ref : (1, E)
    # o_ref : (SB, GROUP*E)  packed output: lane j*E + e  holds out[r*GROUP + j, e]
    SB = xp_ref.shape[0]
    F, E = wT_ref.shape
    GROUP = o_ref.shape[1] // E

    # Load once, compute in f32 (cast only at the final store).
    xv = xp_ref[...].astype(jnp.float32)          # (SB, GROUP*F)
    wT = wT_ref[...].astype(jnp.float32)          # (F, E)
    bias = jnp.broadcast_to(b_ref[...].astype(jnp.float32), (SB, E))  # hoisted

    # One E-wide chunk per packed sub-row j; K=F tiny -> unrolled VPU FMAs.
    for j in range(GROUP):
        acc = bias
        for f in range(F):
            c = j * F + f
            acc = acc + wT[f:f + 1, :] * xv[:, c:c + 1]
        # Static lane-slice store; together the GROUP stores cover the full
        # 128-lane-dense output block (HBM writeback stays unmasked/dense).
        o_ref[:, j * E:(j + 1) * E] = acc.astype(o_ref.dtype)


# ---------------- wrapper ----------------
def token_embedding(x, weight, bias, *, sb_cap=1024):
    """x: (..., F); weight: (E, F) [PyTorch layout]; bias: (E,) -> (..., E).

    sb_cap = max super-rows (GROUP original rows each) per grid step.
    sb_cap=1024 -> 4096 rows/block, ~1.2 MiB double-buffered VMEM.
    """
    lead = x.shape[:-1]
    F = x.shape[-1]
    E = weight.shape[0]
    rows = math.prod(lead)

    if rows == 0 or 128 % E != 0:
        # TODO(synk): lane-packed path assumes embed_dim divides 128; for other
        # embed dims fall back to the XLA fusion (same math, no Pallas).
        return (x.reshape(rows, F) @ weight.T + bias).reshape(*lead, E)

    GROUP = 128 // E                      # original rows packed per super-row

    # --- free layout plumbing (contiguous reshapes only, no transposes) ---
    x2 = x.reshape(rows, F)
    R = pl.cdiv(rows, GROUP)              # super-rows
    R8 = ((R + 7) // 8) * 8               # sublane requirement (decoupled from block)
    SB = R8 if R8 <= sb_cap else sb_cap   # super-rows per block (multiple of 8)
    R_pad = ((R8 + SB - 1) // SB) * SB    # pad to whole blocks (small by construction)
    r_pad = R_pad * GROUP
    if r_pad != rows:
        x2 = jnp.pad(x2, ((0, r_pad - rows), (0, 0)))
    xp = x2.reshape(R_pad, GROUP * F)     # free contiguous reshape

    wT = weight.T                         # (F, E) -- tiny constant
    b2 = bias.reshape(1, E)

    grid = (R_pad // SB,)                 # "parallel" -> both TCs on v7x for big inputs

    outp = pl.pallas_call(
        token_embedding_kernel,
        out_shape=jax.ShapeDtypeStruct((R_pad, GROUP * E), x.dtype),
        grid=grid,
        in_specs=[
            pl.BlockSpec((SB, GROUP * F), lambda i: (i, 0)),   # streaming x block
            pl.BlockSpec((F, E), lambda i: (0, 0)),            # weight.T (constant)
            pl.BlockSpec((1, E), lambda i: (0, 0)),            # bias     (constant)
        ],
        out_specs=pl.BlockSpec((SB, GROUP * E), lambda i: (i, 0)),
        compiler_params=pltpu.CompilerParams(
            dimension_semantics=("parallel",)),
    )(xp, wT, b2)

    out = outp.reshape(r_pad, E)          # free contiguous reshape (no transpose)
    if r_pad != rows:
        out = out[:rows]
    # norm_layer=None -> nn.Identity(): nothing to apply.
    return out.reshape(*lead, E)


# ---------------- demo / correctness check ----------------
if __name__ == "__main__":
    key = jax.random.PRNGKey(0)
    k_x, k_w, k_b = jax.random.split(key, 3)

    B, T, N = 2, 8, 16
    INPUT_DIM, EMBED_DIM = 4, 32

    x = jax.random.normal(k_x, (B, T, N, INPUT_DIM), jnp.float32)
    weight = (jax.random.normal(k_w, (EMBED_DIM, INPUT_DIM), jnp.float32)
              / math.sqrt(INPUT_DIM))                      # nn.Linear.weight (E, F)
    bias = jax.random.normal(k_b, (EMBED_DIM,), jnp.float32) * 0.01

    out = jax.block_until_ready(token_embedding(x, weight, bias))

    # pure-JAX reference (same math as the PyTorch forward)
    ref = x @ weight.T + bias

    assert out.shape == (B, T, N, EMBED_DIM)
    assert jnp.allclose(out, ref, atol=1e-5, rtol=1e-5), \
        float(jnp.max(jnp.abs(out - ref)))
    print("KERNEL_OK")
</pallas_src>

<mosaic_0001>
module attributes {stable_mosaic.version = 11 : i64} {
  func.func @token_embedding_kernel(%arg0: i32, %arg1: memref<64x16xf32, #tpu.memory_space<vmem>>, %arg2: memref<4x32xf32, #tpu.memory_space<vmem>>, %arg3: memref<1x32xf32, #tpu.memory_space<vmem>>, %arg4: memref<64x128xf32, #tpu.memory_space<vmem>>) attributes {dimension_semantics = [#tpu.dimension_semantics<parallel>], iteration_bounds = array<i64: 1>, scalar_prefetch = 0 : i64, scratch_operands = 0 : i64, tpu.core_type = #tpu.core_type<tc>, window_params = [{transform_indices = @transform_0, window_bounds = array<i64: 64, 16>}, {pipeline_mode = #tpu.pipeline_mode<synchronous>, transform_indices = @transform_1, window_bounds = array<i64: 4, 32>}, {pipeline_mode = #tpu.pipeline_mode<synchronous>, transform_indices = @transform_2, window_bounds = array<i64: 1, 32>}, {transform_indices = @transform_3, window_bounds = array<i64: 64, 128>}]} {
    %c0 = arith.constant 0 : index
    %c0_0 = arith.constant 0 : index
    %0 = vector.load %arg1[%c0, %c0_0] : memref<64x16xf32, #tpu.memory_space<vmem>>, vector<64x16xf32>
    %c0_1 = arith.constant 0 : index
    %c0_2 = arith.constant 0 : index
    %1 = vector.load %arg2[%c0_1, %c0_2] : memref<4x32xf32, #tpu.memory_space<vmem>>, vector<4x32xf32>
    %c0_3 = arith.constant 0 : index
    %c0_4 = arith.constant 0 : index
    %2 = vector.load %arg3[%c0_3, %c0_4] : memref<1x32xf32, #tpu.memory_space<vmem>>, vector<1x32xf32>
    %3 = vector.shape_cast %2 : vector<1x32xf32> to vector<1x32xf32>
    %4 = vector.broadcast %3 : vector<1x32xf32> to vector<64x32xf32>
    %5 = vector.extract_strided_slice %1 {offsets = [0, 0], sizes = [1, 32], strides = [1, 1]} : vector<4x32xf32> to vector<1x32xf32>
    %6 = vector.extract_strided_slice %0 {offsets = [0, 0], sizes = [64, 1], strides = [1, 1]} : vector<64x16xf32> to vector<64x1xf32>
    %7 = vector.broadcast %5 : vector<1x32xf32> to vector<64x32xf32>
    %8 = vector.broadcast %6 : vector<64x1xf32> to vector<64x32xf32>
    %9 = arith.mulf %7, %8 : vector<64x32xf32>
    %10 = arith.addf %4, %9 : vector<64x32xf32>
    %11 = vector.extract_strided_slice %1 {offsets = [1, 0], sizes = [1, 32], strides = [1, 1]} : vector<4x32xf32> to vector<1x32xf32>
    %12 = vector.extract_strided_slice %0 {offsets = [0, 1], sizes = [64, 1], strides = [1, 1]} : vector<64x16xf32> to vector<64x1xf32>
    %13 = vector.broadcast %11 : vector<1x32xf32> to vector<64x32xf32>
    %14 = vector.broadcast %12 : vector<64x1xf32> to vector<64x32xf32>
    %15 = arith.mulf %13, %14 : vector<64x32xf32>
    %16 = arith.addf %10, %15 : vector<64x32xf32>
    %17 = vector.extract_strided_slice %1 {offsets = [2, 0], sizes = [1, 32], strides = [1, 1]} : vector<4x32xf32> to vector<1x32xf32>
    %18 = vector.extract_strided_slice %0 {offsets = [0, 2], sizes = [64, 1], strides = [1, 1]} : vector<64x16xf32> to vector<64x1xf32>
    %19 = vector.broadcast %17 : vector<1x32xf32> to vector<64x32xf32>
    %20 = vector.broadcast %18 : vector<64x1xf32> to vector<64x32xf32>
    %21 = arith.mulf %19, %20 : vector<64x32xf32>
    %22 = arith.addf %16, %21 : vector<64x32xf32>
    %23 = vector.extract_strided_slice %1 {offsets = [3, 0], sizes = [1, 32], strides = [1, 1]} : vector<4x32xf32> to vector<1x32xf32>
    %24 = vector.extract_strided_slice %0 {offsets = [0, 3], sizes = [64, 1], strides = [1, 1]} : vector<64x16xf32> to vector<64x1xf32>
    %25 = vector.broadcast %23 : vector<1x32xf32> to vector<64x32xf32>
    %26 = vector.broadcast %24 : vector<64x1xf32> to vector<64x32xf32>
    %27 = arith.mulf %25, %26 : vector<64x32xf32>
    %28 = arith.addf %22, %27 : vector<64x32xf32>
    %c0_5 = arith.constant 0 : index
    %c0_6 = arith.constant 0 : index
    %29 = vector.load %arg4[%c0_5, %c0_6] : memref<64x128xf32, #tpu.memory_space<vmem>>, vector<64x32xf32>
    tpu.vector_store %arg4[%c0_5, %c0_6], %28 {strides = array<i32>} : memref<64x128xf32, #tpu.memory_space<vmem>>, vector<64x32xf32>,
    %30 = vector.extract_strided_slice %1 {offsets = [0, 0], sizes = [1, 32], strides = [1, 1]} : vector<4x32xf32> to vector<1x32xf32>
    %31 = vector.extract_strided_slice %0 {offsets = [0, 4], sizes = [64, 1], strides = [1, 1]} : vector<64x16xf32> to vector<64x1xf32>
    %32 = vector.broadcast %30 : vector<1x32xf32> to vector<64x32xf32>
    %33 = vector.broadcast %31 : vector<64x1xf32> to vector<64x32xf32>
    %34 = arith.mulf %32, %33 : vector<64x32xf32>
    %35 = arith.addf %4, %34 : vector<64x32xf32>
    %36 = vector.extract_strided_slice %1 {offsets = [1, 0], sizes = [1, 32], strides = [1, 1]} : vector<4x32xf32> to vector<1x32xf32>
    %37 = vector.extract_strided_slice %0 {offsets = [0, 5], sizes = [64, 1], strides = [1, 1]} : vector<64x16xf32> to vector<64x1xf32>
    %38 = vector.broadcast %36 : vector<1x32xf32> to vector<64x32xf32>
    %39 = vector.broadcast %37 : vector<64x1xf32> to vector<64x32xf32>
    %40 = arith.mulf %38, %39 : vector<64x32xf32>
    %41 = arith.addf %35, %40 : vector<64x32xf32>
    %42 = vector.extract_strided_slice %1 {offsets = [2, 0], sizes = [1, 32], strides = [1, 1]} : vector<4x32xf32> to vector<1x32xf32>
    %43 = vector.extract_strided_slice %0 {offsets = [0, 6], sizes = [64, 1], strides = [1, 1]} : vector<64x16xf32> to vector<64x1xf32>
    %44 = vector.broadcast %42 : vector<1x32xf32> to vector<64x32xf32>
    %45 = vector.broadcast %43 : vector<64x1xf32> to vector<64x32xf32>
    %46 = arith.mulf %44, %45 : vector<64x32xf32>
    %47 = arith.addf %41, %46 : vector<64x32xf32>
    %48 = vector.extract_strided_slice %1 {offsets = [3, 0], sizes = [1, 32], strides = [1, 1]} : vector<4x32xf32> to vector<1x32xf32>
    %49 = vector.extract_strided_slice %0 {offsets = [0, 7], sizes = [64, 1], strides = [1, 1]} : vector<64x16xf32> to vector<64x1xf32>
    %50 = vector.broadcast %48 : vector<1x32xf32> to vector<64x32xf32>
    %51 = vector.broadcast %49 : vector<64x1xf32> to vector<64x32xf32>
    %52 = arith.mulf %50, %51 : vector<64x32xf32>
    %53 = arith.addf %47, %52 : vector<64x32xf32>
    %c0_7 = arith.constant 0 : index
    %c32 = arith.constant 32 : index
    %54 = vector.load %arg4[%c0_7, %c32] : memref<64x128xf32, #tpu.memory_space<vmem>>, vector<64x32xf32>
    tpu.vector_store %arg4[%c0_7, %c32], %53 {strides = array<i32>} : memref<64x128xf32, #tpu.memory_space<vmem>>, vector<64x32xf32>,
    %55 = vector.extract_strided_slice %1 {offsets = [0, 0], sizes = [1, 32], strides = [1, 1]} : vector<4x32xf32> to vector<1x32xf32>
    %56 = vector.extract_strided_slice %0 {offsets = [0, 8], sizes = [64, 1], strides = [1, 1]} : vector<64x16xf32> to vector<64x1xf32>
    %57 = vector.broadcast %55 : vector<1x32xf32> to vector<64x32xf32>
    %58 = vector.broadcast %56 : vector<64x1xf32> to vector<64x32xf32>
    %59 = arith.mulf %57, %58 : vector<64x32xf32>
    %60 = arith.addf %4, %59 : vector<64x32xf32>
    %61 = vector.extract_strided_slice %1 {offsets = [1, 0], sizes = [1, 32], strides = [1, 1]} : vector<4x32xf32> to vector<1x32xf32>
    %62 = vector.extract_strided_slice %0 {offsets = [0, 9], sizes = [64, 1], strides = [1, 1]} : vector<64x16xf32> to vector<64x1xf32>
    %63 = vector.broadcast %61 : vector<1x32xf32> to vector<64x32xf32>
    %64 = vector.broadcast %62 : vector<64x1xf32> to vector<64x32xf32>
    %65 = arith.mulf %63, %64 : vector<64x32xf32>
    %66 = arith.addf %60, %65 : vector<64x32xf32>
    %67 = vector.extract_strided_slice %1 {offsets = [2, 0], sizes = [1, 32], strides = [1, 1]} : vector<4x32xf32> to vector<1x32xf32>
    %68 = vector.extract_strided_slice %0 {offsets = [0, 10], sizes = [64, 1], strides = [1, 1]} : vector<64x16xf32> to vector<64x1xf32>
    %69 = vector.broadcast %67 : vector<1x32xf32> to vector<64x32xf32>
    %70 = vector.broadcast %68 : vector<64x1xf32> to vector<64x32xf32>
    %71 = arith.mulf %69, %70 : vector<64x32xf32>
    %72 = arith.addf %66, %71 : vector<64x32xf32>
    %73 = vector.extract_strided_slice %1 {offsets = [3, 0], sizes = [1, 32], strides = [1, 1]} : vector<4x32xf32> to vector<1x32xf32>
    %74 = vector.extract_strided_slice %0 {offsets = [0, 11], sizes = [64, 1], strides = [1, 1]} : vector<64x16xf32> to vector<64x1xf32>
    %75 = vector.broadcast %73 : vector<1x32xf32> to vector<64x32xf32>
    %76 = vector.broadcast %74 : vector<64x1xf32> to vector<64x32xf32>
    %77 = arith.mulf %75, %76 : vector<64x32xf32>
    %78 = arith.addf %72, %77 : vector<64x32xf32>
    %c0_8 = arith.constant 0 : index
    %c64 = arith.constant 64 : index
    %79 = vector.load %arg4[%c0_8, %c64] : memref<64x128xf32, #tpu.memory_space<vmem>>, vector<64x32xf32>
    tpu.vector_store %arg4[%c0_8, %c64], %78 {strides = array<i32>} : memref<64x128xf32, #tpu.memory_space<vmem>>, vector<64x32xf32>,
    %80 = vector.extract_strided_slice %1 {offsets = [0, 0], sizes = [1, 32], strides = [1, 1]} : vector<4x32xf32> to vector<1x32xf32>
    %81 = vector.extract_strided_slice %0 {offsets = [0, 12], sizes = [64, 1], strides = [1, 1]} : vector<64x16xf32> to vector<64x1xf32>
    %82 = vector.broadcast %80 : vector<1x32xf32> to vector<64x32xf32>
    %83 = vector.broadcast %81 : vector<64x1xf32> to vector<64x32xf32>
    %84 = arith.mulf %82, %83 : vector<64x32xf32>
    %85 = arith.addf %4, %84 : vector<64x32xf32>
    %86 = vector.extract_strided_slice %1 {offsets = [1, 0], sizes = [1, 32], strides = [1, 1]} : vector<4x32xf32> to vector<1x32xf32>
    %87 = vector.extract_strided_slice %0 {offsets = [0, 13], sizes = [64, 1], strides = [1, 1]} : vector<64x16xf32> to vector<64x1xf32>
    %88 = vector.broadcast %86 : vector<1x32xf32> to vector<64x32xf32>
    %89 = vector.broadcast %87 : vector<64x1xf32> to vector<64x32xf32>
    %90 = arith.mulf %88, %89 : vector<64x32xf32>
    %91 = arith.addf %85, %90 : vector<64x32xf32>
    %92 = vector.extract_strided_slice %1 {offsets = [2, 0], sizes = [1, 32], strides = [1, 1]} : vector<4x32xf32> to vector<1x32xf32>
    %93 = vector.extract_strided_slice %0 {offsets = [0, 14], sizes = [64, 1], strides = [1, 1]} : vector<64x16xf32> to vector<64x1xf32>
    %94 = vector.broadcast %92 : vector<1x32xf32> to vector<64x32xf32>
    %95 = vector.broadcast %93 : vector<64x1xf32> to vector<64x32xf32>
    %96 = arith.mulf %94, %95 : vector<64x32xf32>
    %97 = arith.addf %91, %96 : vector<64x32xf32>
    %98 = vector.extract_strided_slice %1 {offsets = [3, 0], sizes = [1, 32], strides = [1, 1]} : vector<4x32xf32> to vector<1x32xf32>
    %99 = vector.extract_strided_slice %0 {offsets = [0, 15], sizes = [64, 1], strides = [1, 1]} : vector<64x16xf32> to vector<64x1xf32>
    %100 = vector.broadcast %98 : vector<1x32xf32> to vector<64x32xf32>
    %101 = vector.broadcast %99 : vector<64x1xf32> to vector<64x32xf32>
    %102 = arith.mulf %100, %101 : vector<64x32xf32>
    %103 = arith.addf %97, %102 : vector<64x32xf32>
    %c0_9 = arith.constant 0 : index
    %c96 = arith.constant 96 : index
    %104 = vector.load %arg4[%c0_9, %c96] : memref<64x128xf32, #tpu.memory_space<vmem>>, vector<64x32xf32>
    tpu.vector_store %arg4[%c0_9, %c96], %103 {strides = array<i32>} : memref<64x128xf32, #tpu.memory_space<vmem>>, vector<64x32xf32>,
    return
  }
  func.func @transform_0(%arg0: i32) -> (i32, i32) {
    %c0_i32 = arith.constant 0 : i32
    %c0_i32_0 = arith.constant 0 : i32
    return %arg0, %c0_i32 : i32, i32
  }
  func.func @transform_1(%arg0: i32) -> (i32, i32) {
    %c0_i32 = arith.constant 0 : i32
    %c0_i32_0 = arith.constant 0 : i32
    %c0_i32_1 = arith.constant 0 : i32
    return %c0_i32, %c0_i32_0 : i32, i32
  }
  func.func @transform_2(%arg0: i32) -> (i32, i32) {
    %c0_i32 = arith.constant 0 : i32
    %c0_i32_0 = arith.constant 0 : i32
    %c0_i32_1 = arith.constant 0 : i32
    return %c0_i32, %c0_i32_0 : i32, i32
  }
  func.func @transform_3(%arg0: i32) -> (i32, i32) {
    %c0_i32 = arith.constant 0 : i32
    %c0_i32_0 = arith.constant 0 : i32
    return %arg0, %c0_i32 : i32, i32
  }
}

</mosaic_0001>

<bundles_post_ra>
// kernel: tpu_custom_call.1
= control target key start
LH: loop header
LB: loop body
LE: loop exit
PB: predicated region body
PF: predicated region fallthrough
CT: control target
= control target key end

     0   :  { %v1055_v2 = vmov 0   ;;  %s1545_s0 = inlined_call_operand.vmem [shape: f32[64,16], index: 0, kind: input, shape index: {}]   ;;  %s1546_s1 = inlined_call_operand.vmem [shape: f32[4,32], index: 1, kind: input, shape index: {}]   ;;  %s1547_s2 = inlined_call_operand.vmem [shape: f32[1,32], index: 2, kind: input, shape index: {}]   ;;  %s1548_s3 = inlined_call_operand.hbm [shape: f32[64,128], index: 3, kind: output, shape index: {}]  }
   0x1   :  { %v1100_v0 = vld [vmem:[%s1545_s0 + $0x10] sm:$0xff]  ;;  %v1105_v1 = vld [vmem:[%s1545_s0] sm:$0xff]  ;;  %995 = vset.pattern.permute.xlu1 %v1055_v2  ;;  %994 = vset.pattern.permute.xlu0 %v1055_v2  ;;  %v1112_v3 = vld [vmem:[%s1545_s0 + $0x18] sm:$0xff] }
   0x2   :  { %47 = vperm.xlu1 %995, %v1100_v0   ;;  %37 = vperm.xlu0 %994, %v1105_v1   ;;  %v1117_v4 = vld [vmem:[%s1545_s0 + $0x8] sm:$0xff] }
   0x3   :  { %8 = vsyncpa [#allocation3], 0  ;;  %v1124_v5 = vld [vmem:[%s1545_s0 + $0x28] sm:$0xff]  ;;  %v1129_v6 = vld [vmem:[%s1545_s0 + $0x20] sm:$0xff]  ;;  %v1056_v9 = vmov 1   ;;  %v1057_v10 = vmov 2   ;;  %v31_v29 = vlaneseq }
   0x4   :  { %v1136_v7 = vld [vmem:[%s1545_s0 + $0x38] sm:$0xff]  ;;  %v1141_v8 = vld [vmem:[%s1545_s0 + $0x30] sm:$0xff]  ;;  %v1058_v11 = vmov 3   ;;  %v1059_v12 = vmov 4   ;;  %v1060_v13 = vmov 5   ;;  %v1061_v14 = vmov 6  }
   0x5   :  { %v1062_v15 = vmov 7   ;;  %v1063_v28 = vmov 8   ;;  %v32_v32 = vshrl.u32 %v31_v29, 7  ;;  %v23_v36 = vld [vmem:[%s1546_s1] sm:$0xf]  ;;  %vm247_vm0 = vcmask 261120  }
   0x6   :  { %52 = vperm.xlu1 %995, %v1112_v3   ;;  %42 = vperm.xlu0 %994, %v1117_v4   ;;  %v1224_v48 = vld [vmem:[%s1547_s2] ss:$0 sm:$0xff]  ;;  %s1064_s1 = smov 32   ;;  %vm480_vm1 = vcmask 523520   ;;  %s1069_s2 = smov 64   ;;  %vm713_vm2 = vcmask 785920  }
   0x7   :  { %v33_v35 = vsub.s32 0, %v32_v32  ;;  %v93_v40 = vsub.s32 1, %v32_v32  ;;  %v145_v41 = vsub.s32 2, %v32_v32  ;;  %v197_v47 = vsub.s32 3, %v32_v32  ;;  %s1074_s15 = smov [#allocation2]  }
   0x8   :  { %vm946_vm3 = vcmask 1048320   ;;  %s960_s16 = sshll.u32 %s1074_s15, 4  ;;  %s961_s16 = int_to_ptr.vmem [resolvable:$true] %s960_s16 }
   0x9   :  { %v1214_v39 = vrot.slane %v23_v36, %v33_v35  ;;  %v1217_v45 = vrot.slane %v23_v36, %v93_v40  ;;  %v1219_v46 = vrot.slane %v23_v36, %v145_v41  ;;  %v1232_v55 = vrot.slane %v23_v36, %v197_v47  ;;  %s1031_s17 = scalar_lea.vmem %s961_s16, 1024  ;;  %p1036_p1 = scmp.lt.s32.totalorder %s961_s16, %s961_s16 }
   0xa   :  { %62 = vperm.xlu1 %995, %v1124_v5   ;;  %57 = vperm.xlu0 %994, %v1129_v6   ;;  %p1032_p0 = scmp.ne.s32.totalorder %s961_s16, %s1031_s17  ;;  %p1037_p2 = scmp.lt.s32.totalorder %s1031_s17, %s1031_s17 }
   0xc   :  { %p1038_p3 = por %p1037_p2, %p1036_p1 }
   0xe   :  { %72 = vperm.xlu1 %995, %v1136_v7   ;;  %67 = vperm.xlu0 %994, %v1141_v8   ;;  %p1039_p4 = pnand %p1038_p3, %p1032_p0 }
  0x12   :  { %997 = vset.pattern.permute.xlu1 %v1056_v9  ;;  %996 = vset.pattern.permute.xlu0 %v1056_v9 }
  0x13   :  { %100 = vperm.xlu1 %997, %v1117_v4   ;;  %96 = vperm.xlu0 %996, %v1105_v1  }
  0x17   :  { %104 = vperm.xlu1 %997, %v1100_v0   ;;  %108 = vperm.xlu0 %996, %v1112_v3  }
  0x1b   :  { %112 = vperm.xlu1 %997, %v1129_v6   ;;  %116 = vperm.xlu0 %996, %v1124_v5  }
  0x1f   :  { %120 = vperm.xlu1 %997, %v1141_v8   ;;  %124 = vperm.xlu0 %996, %v1136_v7  }
  0x23   :  { %998 = vset.pattern.permute.xlu1 %v1057_v10  ;;  %999 = vset.pattern.permute.xlu0 %v1057_v10 }
  0x24   :  { %148 = vperm.xlu1 %998, %v1105_v1   ;;  %152 = vperm.xlu0 %999, %v1117_v4  }
  0x28   :  { %156 = vperm.xlu1 %998, %v1100_v0   ;;  %164 = vperm.xlu0 %999, %v1129_v6  }
  0x2c   :  { %160 = vperm.xlu1 %998, %v1112_v3   ;;  %172 = vperm.xlu0 %999, %v1141_v8  }
  0x30   :  { %168 = vperm.xlu1 %998, %v1124_v5   ;;  %1000 = vset.pattern.permute.xlu0 %v1058_v11 }
  0x31   :  { %200 = vperm.xlu0 %1000, %v1105_v1  }
  0x34   :  { %176 = vperm.xlu1 %998, %v1136_v7  }
  0x35   :  { %212 = vperm.xlu0 %1000, %v1112_v3  }
  0x38   :  { %1001 = vset.pattern.permute.xlu1 %v1058_v11 }
  0x39   :  { %204 = vperm.xlu1 %1001, %v1117_v4   ;;  %220 = vperm.xlu0 %1000, %v1124_v5  }
  0x3d   :  { %208 = vperm.xlu1 %1001, %v1100_v0   ;;  %228 = vperm.xlu0 %1000, %v1136_v7  }
  0x41   :  { %216 = vperm.xlu1 %1001, %v1129_v6   ;;  %1003 = vset.pattern.permute.xlu0 %v1059_v12 }
  0x42   :  { %261 = vperm.xlu0 %1003, %v1117_v4  }
  0x45   :  { %224 = vperm.xlu1 %1001, %v1141_v8  }
  0x46   :  { %273 = vperm.xlu0 %1003, %v1129_v6  }
  0x49   :  { %1002 = vset.pattern.permute.xlu1 %v1059_v12 }
  0x4a   :  { %257 = vperm.xlu1 %1002, %v1105_v1   ;;  %281 = vperm.xlu0 %1003, %v1141_v8  }
  0x4e   :  { %265 = vperm.xlu1 %1002, %v1100_v0   ;;  %1004 = vset.pattern.permute.xlu0 %v1060_v13 }
  0x4f   :  { %305 = vperm.xlu0 %1004, %v1105_v1  }
  0x52   :  { %269 = vperm.xlu1 %1002, %v1112_v3  }
  0x53   :  { %317 = vperm.xlu0 %1004, %v1112_v3  }
  0x56   :  { %277 = vperm.xlu1 %1002, %v1124_v5  }
  0x57   :  { %325 = vperm.xlu0 %1004, %v1124_v5  }
  0x5a   :  { %285 = vperm.xlu1 %1002, %v1136_v7  }
  0x5b   :  { %333 = vperm.xlu0 %1004, %v1136_v7  }
  0x5e   :  { %1005 = vset.pattern.permute.xlu1 %v1060_v13 }
  0x5f   :  { %309 = vperm.xlu1 %1005, %v1117_v4   ;;  %1007 = vset.pattern.permute.xlu0 %v1061_v14 }
  0x60   :  { %357 = vperm.xlu0 %1007, %v1117_v4  }
  0x63   :  { %313 = vperm.xlu1 %1005, %v1100_v0  }
  0x64   :  { %369 = vperm.xlu0 %1007, %v1129_v6  }
  0x67   :  { %321 = vperm.xlu1 %1005, %v1129_v6  }
  0x68   :  { %377 = vperm.xlu0 %1007, %v1141_v8  }
  0x6b   :  { %329 = vperm.xlu1 %1005, %v1141_v8  }
  0x6c   :  { %1008 = vset.pattern.permute.xlu0 %v1062_v15 }
  0x6d   :  { %401 = vperm.xlu0 %1008, %v1105_v1  }
  0x6f   :  { %1006 = vset.pattern.permute.xlu1 %v1061_v14 }
  0x70   :  { %353 = vperm.xlu1 %1006, %v1105_v1  }
  0x71   :  { %413 = vperm.xlu0 %1008, %v1112_v3  }
  0x74   :  { %361 = vperm.xlu1 %1006, %v1100_v0  }
  0x75   :  { %421 = vperm.xlu0 %1008, %v1124_v5  }
  0x78   :  { %365 = vperm.xlu1 %1006, %v1112_v3  }
  0x79   :  { %429 = vperm.xlu0 %1008, %v1136_v7  }
  0x7c   :  { %373 = vperm.xlu1 %1006, %v1124_v5  }
  0x7d   :  { %1011 = vset.pattern.permute.xlu0 %v1063_v28 }
  0x80   :  { %381 = vperm.xlu1 %1006, %v1136_v7  }
  0x81   :  { %v1197_v16 = vpop.permute.xlu1 %47  ;;  %v38_v17 = vpop.permute.xlu0 %37 }
  0x82   :  { %v75_v42 = vmul.f32 %v38_v17, %v1214_v39  ;;  %v77_v17 = vmul.f32 %v1197_v16, %v1214_v39 }
  0x84   :  { %1009 = vset.pattern.permute.xlu1 %v1062_v15  ;;  %v83_v49 = vadd.f32 %v1224_v48, %v75_v42  ;;  %v85_v36 = vadd.f32 %v1224_v48, %v77_v17 }
  0x85   :  { %v53_v18 = vpop.permute.xlu1 %52  ;;  %405 = vperm.xlu1 %1009, %v1117_v4   ;;  %v43_v19 = vpop.permute.xlu0 %42 }
  0x86   :  { %v78_v53 = vmul.f32 %v53_v18, %v1214_v39  ;;  %v76_v56 = vmul.f32 %v43_v19, %v1214_v39 }
  0x88   :  { %v86_v60 = vadd.f32 %v1224_v48, %v78_v53  ;;  %v84_v10 = vadd.f32 %v1224_v48, %v76_v56 }
  0x89   :  { %v63_v20 = vpop.permute.xlu1 %62  ;;  %409 = vperm.xlu1 %1009, %v1100_v0   ;;  %v1201_v21 = vpop.permute.xlu0 %57 }
  0x8a   :  { %v80_v62 = vmul.f32 %v63_v20, %v1214_v39  ;;  %v79_v29 = vmul.f32 %v1201_v21, %v1214_v39 }
  0x8d   :  { %v73_v22 = vpop.permute.xlu1 %72  ;;  %417 = vperm.xlu1 %1009, %v1129_v6   ;;  %v1204_v23 = vpop.permute.xlu0 %67 }
  0x8e   :  { %v82_v18 = vmul.f32 %v73_v22, %v1214_v39  ;;  %v81_v56 = vmul.f32 %v1204_v23, %v1214_v39 }
  0x91   :  { %425 = vperm.xlu1 %1009, %v1141_v8  }
  0x92   :  { %v101_v24 = vpop.permute.xlu1 %100  ;;  %v97_v25 = vpop.permute.xlu0 %96 }
  0x93   :  { %v127_v50 = vmul.f32 %v97_v25, %v1217_v45  ;;  %v128_v11 = vmul.f32 %v101_v24, %v1217_v45  ;;  %v88_v25 = vadd.f32 %v1224_v48, %v80_v62 }
  0x95   :  { %1010 = vset.pattern.permute.xlu1 %v1063_v28  ;;  %v135_v57 = vadd.f32 %v127_v50, %v83_v49 }
  0x96   :  { %v105_v26 = vpop.permute.xlu1 %104  ;;  %v109_v27 = vpop.permute.xlu0 %108 }
  0x97   :  { %v130_v58 = vmul.f32 %v109_v27, %v1217_v45  ;;  %v129_v16 = vmul.f32 %v105_v26, %v1217_v45 }
  0x99   :  { %v138_v12 = vadd.f32 %v130_v58, %v86_v60  ;;  %v137_v50 = vadd.f32 %v129_v16, %v85_v36 }
  0x9a   :  { %v1207_v30 = vpop.permute.xlu1 %112  ;;  %v117_v31 = vpop.permute.xlu0 %116 }
  0x9b   :  { %v132_v13 = vmul.f32 %v117_v31, %v1217_v45  ;;  %v136_v31 = vadd.f32 %v128_v11, %v84_v10 }
  0x9d   :  { %v140_v32 = vadd.f32 %v132_v13, %v88_v25 }
  0x9e   :  { %v1209_v33 = vpop.permute.xlu1 %120  ;;  %v125_v34 = vpop.permute.xlu0 %124 }
  0x9f   :  { %v134_v22 = vmul.f32 %v125_v34, %v1217_v45  ;;  %v87_v34 = vadd.f32 %v1224_v48, %v79_v29 }
  0xa3   :  { %v149_v37 = vpop.permute.xlu1 %148  ;;  %v153_v38 = vpop.permute.xlu0 %152 }
  0xa4   :  { %v179_v54 = vmul.f32 %v149_v37, %v1219_v46  ;;  %v180_v19 = vmul.f32 %v153_v38, %v1219_v46  ;;  %v90_v37 = vadd.f32 %v1224_v48, %v82_v18 }
  0xa6   :  { %v187_v63 = vadd.f32 %v179_v54, %v135_v57  ;;  %v188_v38 = vadd.f32 %v180_v19, %v136_v31  ;;  %v142_v53 = vadd.f32 %v134_v22, %v90_v37 }
  0xa7   :  { %v157_v43 = vpop.permute.xlu1 %156  ;;  %v165_v44 = vpop.permute.xlu0 %164 }
  0xa8   :  { %v181_v40 = vmul.f32 %v157_v43, %v1219_v46  ;;  %v183_v57 = vmul.f32 %v165_v44, %v1219_v46  ;;  %v89_v44 = vadd.f32 %v1224_v48, %v81_v56 }
  0xaa   :  { %v189_v60 = vadd.f32 %v181_v40, %v137_v50 }
  0xab   :  { %v161_v51 = vpop.permute.xlu1 %160  ;;  %v1228_v52 = vpop.permute.xlu0 %172 }
  0xac   :  { %v182_v2 = vmul.f32 %v161_v51, %v1219_v46  ;;  %v131_v51 = vmul.f32 %v1207_v30, %v1217_v45 }
  0xae   :  { %v190_v27 = vadd.f32 %v182_v2, %v138_v12  ;;  %v139_v30 = vadd.f32 %v131_v51, %v87_v34  ;;  %v133_v2 = vmul.f32 %v1209_v33, %v1217_v45  ;;  %v185_v12 = vmul.f32 %v1228_v52, %v1219_v46 }
  0xaf   :  { %v169_v59 = vpop.permute.xlu1 %168 }
  0xb0   :  { %v201_v61 = vpop.permute.xlu0 %200  ;;  %v184_v28 = vmul.f32 %v169_v59, %v1219_v46  ;;  %v191_v11 = vadd.f32 %v183_v57, %v139_v30 }
  0xb1   :  { %v231_v9 = vmul.f32 %v201_v61, %v1232_v55 }
  0xb2   :  { %v192_v47 = vadd.f32 %v184_v28, %v140_v32 }
  0xb3   :  { %v239_v14 = vadd.f32 %v231_v9, %v187_v63  ;;  %v177_v15 = vpop.permute.xlu1 %176 }
  0xb4   :  { %v213_v20 = vpop.permute.xlu0 %212  ;;  %v186_v49 = vmul.f32 %v177_v15, %v1219_v46  ;;  %v141_v15 = vadd.f32 %v133_v2, %v89_v44 }
  0xb5   :  { %v234_v24 = vmul.f32 %v213_v20, %v1232_v55  ;;  %248 = vst.msk [vmem:[#allocation2] sm:$0xff] %vm247_vm0, %v239_v14 }
  0xb6   :  { %v194_v61 = vadd.f32 %v186_v49, %v142_v53  ;;  %v193_v33 = vadd.f32 %v185_v12, %v141_v15 }
  0xb7   :  { %v242_v35 = vadd.f32 %v234_v24, %v190_v27 }
  0xb8   :  { %v205_v41 = vpop.permute.xlu1 %204  ;;  %v221_v42 = vpop.permute.xlu0 %220 }
  0xb9   :  { %v232_v21 = vmul.f32 %v205_v41, %v1232_v55  ;;  %v236_v26 = vmul.f32 %v221_v42, %v1232_v55  ;;  %251 = vst.msk [vmem:[#allocation2 + $0x18] sm:$0xff] %vm247_vm0, %v242_v35 }
  0xbb   :  { %v240_v54 = vadd.f32 %v232_v21, %v188_v38  ;;  %v244_v43 = vadd.f32 %v236_v26, %v192_v47 }
  0xbc   :  { %v209_v58 = vpop.permute.xlu1 %208  ;;  %v229_v59 = vpop.permute.xlu0 %228 }
  0xbd   :  { %v233_v62 = vmul.f32 %v209_v58, %v1232_v55  ;;  %v238_v63 = vmul.f32 %v229_v59, %v1232_v55  ;;  %249 = vst.msk [vmem:[#allocation2 + $0x8] sm:$0xff] %vm247_vm0, %v240_v54  ;;  %253 = vst.msk [vmem:[#allocation2 + $0x28] sm:$0xff] %vm247_vm0, %v244_v43 }
  0xbf   :  { %v241_v9 = vadd.f32 %v233_v62, %v189_v60  ;;  %v246_v23 = vadd.f32 %v238_v63, %v194_v61 }
  0xc0   :  { %v217_v10 = vpop.permute.xlu1 %216 }
  0xc1   :  { %v235_v13 = vmul.f32 %v217_v10, %v1232_v55  ;;  %v262_v14 = vpop.permute.xlu0 %261  ;;  %250 = vst.msk [vmem:[#allocation2 + $0x10] sm:$0xff] %vm247_vm0, %v241_v9  ;;  %255 = vst.msk [vmem:[#allocation2 + $0x38] sm:$0xff] %vm247_vm0, %v246_v23 }
  0xc2   :  { %v289_v59 = vmul.f32 %v262_v14, %v1214_v39 }
  0xc3   :  { %v243_v17 = vadd.f32 %v235_v13, %v191_v11 }
  0xc4   :  { %v225_v18 = vpop.permute.xlu1 %224  ;;  %v297_v63 = vadd.f32 %v1224_v48, %v289_v59 }
  0xc5   :  { %v237_v19 = vmul.f32 %v225_v18, %v1232_v55  ;;  %v274_v20 = vpop.permute.xlu0 %273  ;;  %252 = vst.msk [vmem:[#allocation2 + $0x20] sm:$0xff] %vm247_vm0, %v243_v17 }
  0xc6   :  { %v292_v13 = vmul.f32 %v274_v20, %v1214_v39 }
  0xc7   :  { %v245_v25 = vadd.f32 %v237_v19, %v193_v33 }
  0xc9   :  { %v258_v27 = vpop.permute.xlu1 %257  ;;  %v282_v28 = vpop.permute.xlu0 %281  ;;  %254 = vst.msk [vmem:[#allocation2 + $0x30] sm:$0xff] %vm247_vm0, %v245_v25 }
  0xca   :  { %v288_v47 = vmul.f32 %v258_v27, %v1214_v39 }
  0xcc   :  { %v296_v34 = vadd.f32 %v1224_v48, %v288_v47 }
  0xcd   :  { %v266_v52 = vpop.permute.xlu1 %265 }
  0xce   :  { %v306_v24 = vpop.permute.xlu0 %305  ;;  %v290_v30 = vmul.f32 %v266_v52, %v1214_v39 }
  0xcf   :  { %v336_v21 = vmul.f32 %v306_v24, %v1217_v45 }
  0xd0   :  { %v298_v15 = vadd.f32 %v1224_v48, %v290_v30 }
  0xd1   :  { %v270_v29 = vpop.permute.xlu1 %269  ;;  %v344_v51 = vadd.f32 %v336_v21, %v296_v34 }
  0xd2   :  { %v318_v31 = vpop.permute.xlu0 %317  ;;  %v291_v61 = vmul.f32 %v270_v29, %v1214_v39 }
  0xd3   :  { %v339_v23 = vmul.f32 %v318_v31, %v1217_v45  ;;  %v300_v31 = vadd.f32 %v1224_v48, %v292_v13 }
  0xd4   :  { %v299_v9 = vadd.f32 %v1224_v48, %v291_v61 }
  0xd5   :  { %v278_v16 = vpop.permute.xlu1 %277 }
  0xd6   :  { %v326_v32 = vpop.permute.xlu0 %325  ;;  %v293_v10 = vmul.f32 %v278_v16, %v1214_v39  ;;  %v347_v18 = vadd.f32 %v339_v23, %v299_v9  ;;  %v294_v16 = vmul.f32 %v282_v28, %v1214_v39 }
  0xd7   :  { %v341_v19 = vmul.f32 %v326_v32, %v1217_v45 }
  0xd8   :  { %v301_v33 = vadd.f32 %v1224_v48, %v293_v10 }
  0xd9   :  { %v286_v22 = vpop.permute.xlu1 %285 }
  0xda   :  { %v334_v35 = vpop.permute.xlu0 %333  ;;  %v295_v25 = vmul.f32 %v286_v22, %v1214_v39  ;;  %v349_v21 = vadd.f32 %v341_v19, %v301_v33 }
  0xde   :  { %v310_v36 = vpop.permute.xlu1 %309 }
  0xdf   :  { %v358_v37 = vpop.permute.xlu0 %357  ;;  %v337_v62 = vmul.f32 %v310_v36, %v1217_v45 }
  0xe0   :  { %v385_v12 = vmul.f32 %v358_v37, %v1219_v46 }
  0xe1   :  { %v345_v11 = vadd.f32 %v337_v62, %v297_v63 }
  0xe2   :  { %v314_v38 = vpop.permute.xlu1 %313 }
  0xe3   :  { %v370_v40 = vpop.permute.xlu0 %369  ;;  %v338_v14 = vmul.f32 %v314_v38, %v1217_v45  ;;  %v393_v52 = vadd.f32 %v385_v12, %v345_v11 }
  0xe4   :  { %v388_v34 = vmul.f32 %v370_v40, %v1219_v46 }
  0xe5   :  { %v346_v36 = vadd.f32 %v338_v14, %v298_v15  ;;  %v1065_v14 = vmov 9   ;;  %v1066_v15 = vmov 10  }
  0xe6   :  { %v322_v41 = vpop.permute.xlu1 %321 }
  0xe7   :  { %v1283_v42 = vpop.permute.xlu0 %377  ;;  %v340_v24 = vmul.f32 %v322_v41, %v1217_v45  ;;  %v343_v41 = vmul.f32 %v334_v35, %v1217_v45 }
  0xe8   :  { %v390_v40 = vmul.f32 %v1283_v42, %v1219_v46 }
  0xea   :  { %v330_v49 = vpop.permute.xlu1 %329 }
  0xec   :  { %v402_v26 = vpop.permute.xlu0 %401 }
  0xed   :  { %v432_v54 = vmul.f32 %v402_v26, %v1232_v55  ;;  %v303_v26 = vadd.f32 %v1224_v48, %v295_v25 }
  0xef   :  { %v354_v50 = vpop.permute.xlu1 %353 }
  0xf0   :  { %v384_v53 = vmul.f32 %v354_v50, %v1219_v46  ;;  %v414_v44 = vpop.permute.xlu0 %413 }
  0xf1   :  { %v435_v47 = vmul.f32 %v414_v44, %v1232_v55 }
  0xf2   :  { %v392_v43 = vadd.f32 %v384_v53, %v344_v51  ;;  %v348_v51 = vadd.f32 %v340_v24, %v300_v31  ;;  %v342_v53 = vmul.f32 %v330_v49, %v1217_v45 }
  0xf3   :  { %v362_v56 = vpop.permute.xlu1 %361 }
  0xf4   :  { %v440_v57 = vadd.f32 %v432_v54, %v392_v43  ;;  %v386_v29 = vmul.f32 %v362_v56, %v1219_v46  ;;  %v422_v37 = vpop.permute.xlu0 %421  ;;  %v302_v43 = vadd.f32 %v1224_v48, %v294_v16  ;;  %v396_v62 = vadd.f32 %v388_v34, %v348_v51 }
  0xf5   :  { %v437_v56 = vmul.f32 %v422_v37, %v1232_v55 }
  0xf6   :  { %456 = vrot.lane.b32.xlu1 %v440_v57, %s1064_s1  ;;  %v394_v28 = vadd.f32 %v386_v29, %v346_v36  ;;  %v350_v63 = vadd.f32 %v342_v53, %v302_v43 }
  0xf7   :  { %v366_v58 = vpop.permute.xlu1 %365 }
  0xf8   :  { %v387_v17 = vmul.f32 %v366_v58, %v1219_v46  ;;  %v430_v61 = vpop.permute.xlu0 %429  ;;  %v398_v11 = vadd.f32 %v390_v40, %v350_v63 }
  0xf9   :  { %v439_v10 = vmul.f32 %v430_v61, %v1232_v55 }
  0xfa   :  { %v395_v38 = vadd.f32 %v387_v17, %v347_v18  ;;  %v1067_v17 = vmov 11   ;;  %v1068_v18 = vmov 12  }
  0xfb   :  { %v374_v60 = vpop.permute.xlu1 %373 }
  0xfc   :  { %v389_v32 = vmul.f32 %v374_v60, %v1219_v46  ;;  %v443_v57 = vadd.f32 %v435_v47, %v395_v38  ;;  %v351_v60 = vadd.f32 %v343_v41, %v303_v26 }
  0xfe   :  { %v397_v58 = vadd.f32 %v389_v32, %v349_v21 }
  0xff   :  { %v382_v2 = vpop.permute.xlu1 %381 }
 0x100   :  { %v391_v59 = vmul.f32 %v382_v2, %v1219_v46  ;;  %v445_v9 = vadd.f32 %v437_v56, %v397_v58 }
 0x102   :  { %v399_v23 = vadd.f32 %v391_v59, %v351_v60 }
 0x104   :  { %v406_v27 = vpop.permute.xlu1 %405  ;;  %v447_v42 = vadd.f32 %v439_v10, %v399_v23 }
 0x105   :  { %v433_v20 = vmul.f32 %v406_v27, %v1232_v55 }
 0x107   :  { %v441_v22 = vadd.f32 %v433_v20, %v393_v52 }
 0x108   :  { %v410_v50 = vpop.permute.xlu1 %409 }
 0x109   :  { %v434_v54 = vmul.f32 %v410_v50, %v1232_v55  ;;  %458 = vrot.lane.b32.xlu0 %v441_v22, %s1064_s1 }
 0x10b   :  { %v442_v35 = vadd.f32 %v434_v54, %v394_v28 }
 0x10c   :  { %v418_v49 = vpop.permute.xlu1 %417 }
 0x10d   :  { %v436_v30 = vmul.f32 %v418_v49, %v1232_v55  ;;  %460 = vrot.lane.b32.xlu1 %v442_v35, %s1064_s1  ;;  %462 = vrot.lane.b32.xlu0 %v443_v57, %s1064_s1 }
 0x10f   :  { %v444_v2 = vadd.f32 %v436_v30, %v396_v62 }
 0x110   :  { %v426_v44 = vpop.permute.xlu1 %425 }
 0x111   :  { %v438_v12 = vmul.f32 %v426_v44, %v1232_v55  ;;  %464 = vrot.lane.b32.xlu1 %v444_v2, %s1064_s1  ;;  %466 = vrot.lane.b32.xlu0 %v445_v9, %s1064_s1 }
 0x113   :  { %v446_v13 = vadd.f32 %v438_v12, %v398_v11 }
 0x115   :  { %468 = vrot.lane.b32.xlu1 %v446_v13, %s1064_s1  ;;  %470 = vrot.lane.b32.xlu0 %v447_v42, %s1064_s1 }
 0x119   :  { %490 = vperm.xlu1 %1010, %v1105_v1   ;;  %494 = vperm.xlu0 %1011, %v1117_v4  }
 0x11d   :  { %498 = vperm.xlu1 %1010, %v1100_v0   ;;  %506 = vperm.xlu0 %1011, %v1129_v6  }
 0x121   :  { %502 = vperm.xlu1 %1010, %v1112_v3   ;;  %514 = vperm.xlu0 %1011, %v1141_v8  }
 0x125   :  { %510 = vperm.xlu1 %1010, %v1124_v5   ;;  %1012 = vset.pattern.permute.xlu0 %v1065_v14 }
 0x126   :  { %538 = vperm.xlu0 %1012, %v1105_v1  }
 0x129   :  { %518 = vperm.xlu1 %1010, %v1136_v7  }
 0x12a   :  { %550 = vperm.xlu0 %1012, %v1112_v3  }
 0x12d   :  { %1013 = vset.pattern.permute.xlu1 %v1065_v14 }
 0x12e   :  { %542 = vperm.xlu1 %1013, %v1117_v4   ;;  %558 = vperm.xlu0 %1012, %v1124_v5  }
 0x132   :  { %546 = vperm.xlu1 %1013, %v1100_v0   ;;  %566 = vperm.xlu0 %1012, %v1136_v7  }
 0x136   :  { %554 = vperm.xlu1 %1013, %v1129_v6   ;;  %1015 = vset.pattern.permute.xlu0 %v1066_v15 }
 0x137   :  { %590 = vperm.xlu0 %1015, %v1117_v4  }
 0x13a   :  { %562 = vperm.xlu1 %1013, %v1141_v8  }
 0x13b   :  { %602 = vperm.xlu0 %1015, %v1129_v6  }
 0x13e   :  { %1014 = vset.pattern.permute.xlu1 %v1066_v15 }
 0x13f   :  { %586 = vperm.xlu1 %1014, %v1105_v1   ;;  %610 = vperm.xlu0 %1015, %v1141_v8  }
 0x143   :  { %594 = vperm.xlu1 %1014, %v1100_v0   ;;  %1016 = vset.pattern.permute.xlu0 %v1067_v17 }
 0x144   :  { %634 = vperm.xlu0 %1016, %v1105_v1  }
 0x147   :  { %598 = vperm.xlu1 %1014, %v1112_v3  }
 0x148   :  { %646 = vperm.xlu0 %1016, %v1112_v3  }
 0x14b   :  { %606 = vperm.xlu1 %1014, %v1124_v5  }
 0x14c   :  { %654 = vperm.xlu0 %1016, %v1124_v5  }
 0x14f   :  { %614 = vperm.xlu1 %1014, %v1136_v7  }
 0x150   :  { %662 = vperm.xlu0 %1016, %v1136_v7  }
 0x153   :  { %1017 = vset.pattern.permute.xlu1 %v1067_v17 }
 0x154   :  { %638 = vperm.xlu1 %1017, %v1117_v4   ;;  %1019 = vset.pattern.permute.xlu0 %v1068_v18 }
 0x158   :  { %642 = vperm.xlu1 %1017, %v1100_v0  }
 0x15c   :  { %650 = vperm.xlu1 %1017, %v1129_v6  }
 0x160   :  { %658 = vperm.xlu1 %1017, %v1141_v8  }
 0x164   :  { %1018 = vset.pattern.permute.xlu1 %v1068_v18 }
 0x168   :  { %v457_v33 = vpop.permute.xlu1 %456 }
 0x169   :  { %481 = vst.msk [vmem:[#allocation2] sm:$0xff] %vm480_vm1, %v457_v33 }
 0x17b   :  { %v459_v19 = vpop.permute.xlu0 %458 }
 0x17c   :  { %482 = vst.msk [vmem:[#allocation2 + $0x8] sm:$0xff] %vm480_vm1, %v459_v19 }
 0x17f   :  { %v461_v25 = vpop.permute.xlu1 %460  ;;  %v463_v27 = vpop.permute.xlu0 %462 }
 0x180   :  { %483 = vst.msk [vmem:[#allocation2 + $0x10] sm:$0xff] %vm480_vm1, %v461_v25  ;;  %484 = vst.msk [vmem:[#allocation2 + $0x18] sm:$0xff] %vm480_vm1, %v463_v27 }
 0x183   :  { %v465_v52 = vpop.permute.xlu1 %464  ;;  %v467_v24 = vpop.permute.xlu0 %466 }
 0x184   :  { %485 = vst.msk [vmem:[#allocation2 + $0x20] sm:$0xff] %vm480_vm1, %v465_v52  ;;  %486 = vst.msk [vmem:[#allocation2 + $0x28] sm:$0xff] %vm480_vm1, %v467_v24 }
 0x187   :  { %v469_v29 = vpop.permute.xlu1 %468  ;;  %v471_v20 = vpop.permute.xlu0 %470 }
 0x188   :  { %487 = vst.msk [vmem:[#allocation2 + $0x30] sm:$0xff] %vm480_vm1, %v469_v29  ;;  %488 = vst.msk [vmem:[#allocation2 + $0x38] sm:$0xff] %vm480_vm1, %v471_v20 }
 0x198   :  { %v491_v31 = vpop.permute.xlu1 %490  ;;  %v495_v16 = vpop.permute.xlu0 %494 }
 0x199   :  { %v521_v56 = vmul.f32 %v491_v31, %v1214_v39  ;;  %v522_v10 = vmul.f32 %v495_v16, %v1214_v39 }
 0x19b   :  { %v529_v35 = vadd.f32 %v1224_v48, %v521_v56  ;;  %v530_v14 = vadd.f32 %v1224_v48, %v522_v10 }
 0x19c   :  { %v499_v36 = vpop.permute.xlu1 %498  ;;  %v507_v37 = vpop.permute.xlu0 %506 }
 0x19d   :  { %v523_v12 = vmul.f32 %v499_v36, %v1214_v39  ;;  %v525_v52 = vmul.f32 %v507_v37, %v1214_v39 }
 0x19f   :  { %v531_v27 = vadd.f32 %v1224_v48, %v523_v12 }
 0x1a0   :  { %v503_v38 = vpop.permute.xlu1 %502  ;;  %v515_v47 = vpop.permute.xlu0 %514 }
 0x1a1   :  { %v524_v2 = vmul.f32 %v503_v38, %v1214_v39 }
 0x1a3   :  { %v532_v17 = vadd.f32 %v1224_v48, %v524_v2 }
 0x1a4   :  { %v511_v32 = vpop.permute.xlu1 %510 }
 0x1a5   :  { %v539_v22 = vpop.permute.xlu0 %538  ;;  %v526_v33 = vmul.f32 %v511_v32, %v1214_v39 }
 0x1a6   :  { %v569_v57 = vmul.f32 %v539_v22, %v1217_v45 }
 0x1a8   :  { %v519_v21 = vpop.permute.xlu1 %518  ;;  %v577_v40 = vadd.f32 %v569_v57, %v529_v35  ;;  %v527_v57 = vmul.f32 %v515_v47, %v1214_v39 }
 0x1a9   :  { %v551_v26 = vpop.permute.xlu0 %550  ;;  %v528_v38 = vmul.f32 %v519_v21, %v1214_v39 }
 0x1aa   :  { %v572_v42 = vmul.f32 %v551_v26, %v1217_v45 }
 0x1ac   :  { %v580_v24 = vadd.f32 %v572_v42, %v532_v17 }
 0x1ad   :  { %v543_v41 = vpop.permute.xlu1 %542  ;;  %v559_v34 = vpop.permute.xlu0 %558 }
 0x1ae   :  { %v570_v44 = vmul.f32 %v543_v41, %v1217_v45  ;;  %v574_v20 = vmul.f32 %v559_v34, %v1217_v45  ;;  %v533_v34 = vadd.f32 %v1224_v48, %v525_v52  ;;  %v1072_v52 = vmov 15  }
 0x1b0   :  { %v578_v19 = vadd.f32 %v570_v44, %v530_v14 }
 0x1b1   :  { %v547_v50 = vpop.permute.xlu1 %546  ;;  %v567_v51 = vpop.permute.xlu0 %566 }
 0x1b2   :  { %v571_v25 = vmul.f32 %v547_v50, %v1217_v45  ;;  %v534_v50 = vadd.f32 %v1224_v48, %v526_v33 }
 0x1b4   :  { %v579_v37 = vadd.f32 %v571_v25, %v531_v27  ;;  %v582_v21 = vadd.f32 %v574_v20, %v534_v50  ;;  %v1070_v25 = vmov 13   ;;  %v1071_v27 = vmov 14  }
 0x1b5   :  { %v555_v53 = vpop.permute.xlu1 %554 }
 0x1b6   :  { %v591_v28 = vpop.permute.xlu0 %590  ;;  %v573_v32 = vmul.f32 %v555_v53, %v1217_v45 }
 0x1b7   :  { %v618_v15 = vmul.f32 %v591_v28, %v1219_v46 }
 0x1b9   :  { %v563_v54 = vpop.permute.xlu1 %562  ;;  %v626_v31 = vadd.f32 %v618_v15, %v578_v19 }
 0x1ba   :  { %v603_v43 = vpop.permute.xlu0 %602 }
 0x1bb   :  { %v621_v53 = vmul.f32 %v603_v43, %v1219_v46 }
 0x1be   :  { %v587_v58 = vpop.permute.xlu1 %586  ;;  %v1376_v59 = vpop.permute.xlu0 %610 }
 0x1bf   :  { %v617_v60 = vmul.f32 %v587_v58, %v1219_v46  ;;  %v576_v58 = vmul.f32 %v567_v51, %v1217_v45  ;;  %v623_v12 = vmul.f32 %v1376_v59, %v1219_v46 }
 0x1c1   :  { %v625_v62 = vadd.f32 %v617_v60, %v577_v40 }
 0x1c2   :  { %v595_v61 = vpop.permute.xlu1 %594 }
 0x1c3   :  { %v635_v49 = vpop.permute.xlu0 %634  ;;  %v619_v16 = vmul.f32 %v595_v61, %v1219_v46  ;;  %v536_v61 = vadd.f32 %v1224_v48, %v528_v38 }
 0x1c4   :  { %v665_v63 = vmul.f32 %v635_v49, %v1232_v55  ;;  %v581_v49 = vadd.f32 %v573_v32, %v533_v34 }
 0x1c5   :  { %v627_v60 = vadd.f32 %v619_v16, %v579_v37  ;;  %v584_v43 = vadd.f32 %v576_v58, %v536_v61 }
 0x1c6   :  { %v673_v30 = vadd.f32 %v665_v63, %v625_v62  ;;  %v599_v9 = vpop.permute.xlu1 %598  ;;  %v575_v62 = vmul.f32 %v563_v54, %v1217_v45  ;;  %v629_v44 = vadd.f32 %v621_v53, %v581_v49 }
 0x1c7   :  { %v647_v13 = vpop.permute.xlu0 %646  ;;  %v620_v18 = vmul.f32 %v599_v9, %v1219_v46 }
 0x1c8   :  { %689 = vrot.lane.b32.xlu1 %v673_v30, %s1069_s2  ;;  %v668_v26 = vmul.f32 %v647_v13, %v1232_v55 }
 0x1c9   :  { %v628_v22 = vadd.f32 %v620_v18, %v580_v24 }
 0x1ca   :  { %v607_v23 = vpop.permute.xlu1 %606 }
 0x1cb   :  { %v655_v41 = vpop.permute.xlu0 %654  ;;  %v622_v28 = vmul.f32 %v607_v23, %v1219_v46  ;;  %v676_v63 = vadd.f32 %v668_v26, %v628_v22  ;;  %v535_v23 = vadd.f32 %v1224_v48, %v527_v57 }
 0x1cc   :  { %v670_v47 = vmul.f32 %v655_v41, %v1232_v55 }
 0x1cd   :  { %v630_v30 = vadd.f32 %v622_v28, %v582_v21  ;;  %v583_v54 = vadd.f32 %v575_v62, %v535_v23 }
 0x1ce   :  { %v615_v11 = vpop.permute.xlu1 %614 }
 0x1cf   :  { %v624_v51 = vmul.f32 %v615_v11, %v1219_v46  ;;  %v663_v10 = vpop.permute.xlu0 %662  ;;  %v678_v13 = vadd.f32 %v670_v47, %v630_v30  ;;  %v631_v18 = vadd.f32 %v623_v12, %v583_v54 }
 0x1d0   :  { %v672_v11 = vmul.f32 %v663_v10, %v1232_v55 }
 0x1d1   :  { %v632_v14 = vadd.f32 %v624_v51, %v584_v43 }
 0x1d3   :  { %v639_v29 = vpop.permute.xlu1 %638  ;;  %v680_v59 = vadd.f32 %v672_v11, %v632_v14 }
 0x1d4   :  { %v666_v36 = vmul.f32 %v639_v29, %v1232_v55 }
 0x1d6   :  { %v674_v56 = vadd.f32 %v666_v36, %v626_v31 }
 0x1d7   :  { %v643_v35 = vpop.permute.xlu1 %642 }
 0x1d8   :  { %v667_v40 = vmul.f32 %v643_v35, %v1232_v55  ;;  %691 = vrot.lane.b32.xlu0 %v674_v56, %s1069_s2 }
 0x1da   :  { %v675_v9 = vadd.f32 %v667_v40, %v627_v60 }
 0x1db   :  { %v651_v2 = vpop.permute.xlu1 %650 }
 0x1dc   :  { %v669_v42 = vmul.f32 %v651_v2, %v1232_v55  ;;  %693 = vrot.lane.b32.xlu1 %v675_v9, %s1069_s2  ;;  %695 = vrot.lane.b32.xlu0 %v676_v63, %s1069_s2 }
 0x1de   :  { %v677_v15 = vadd.f32 %v669_v42, %v629_v44 }
 0x1df   :  { %v659_v17 = vpop.permute.xlu1 %658 }
 0x1e0   :  { %v671_v33 = vmul.f32 %v659_v17, %v1232_v55  ;;  %697 = vrot.lane.b32.xlu1 %v677_v15, %s1069_s2  ;;  %699 = vrot.lane.b32.xlu0 %v678_v13, %s1069_s2 }
 0x1e2   :  { %v679_v19 = vadd.f32 %v671_v33, %v631_v18 }
 0x1e4   :  { %701 = vrot.lane.b32.xlu1 %v679_v19, %s1069_s2  ;;  %703 = vrot.lane.b32.xlu0 %v680_v59, %s1069_s2 }
 0x1e8   :  { %723 = vperm.xlu1 %1018, %v1105_v1   ;;  %727 = vperm.xlu0 %1019, %v1117_v4  }
 0x1ec   :  { %731 = vperm.xlu1 %1018, %v1100_v0   ;;  %739 = vperm.xlu0 %1019, %v1129_v6  }
 0x1f0   :  { %735 = vperm.xlu1 %1018, %v1112_v3   ;;  %747 = vperm.xlu0 %1019, %v1141_v8  }
 0x1f4   :  { %743 = vperm.xlu1 %1018, %v1124_v5   ;;  %1020 = vset.pattern.permute.xlu0 %v1070_v25 }
 0x1f5   :  { %771 = vperm.xlu0 %1020, %v1105_v1  }
 0x1f8   :  { %751 = vperm.xlu1 %1018, %v1136_v7  }
 0x1f9   :  { %783 = vperm.xlu0 %1020, %v1112_v3  }
 0x1fc   :  { %1021 = vset.pattern.permute.xlu1 %v1070_v25 }
 0x1fd   :  { %775 = vperm.xlu1 %1021, %v1117_v4   ;;  %791 = vperm.xlu0 %1020, %v1124_v5  }
 0x201   :  { %779 = vperm.xlu1 %1021, %v1100_v0   ;;  %799 = vperm.xlu0 %1020, %v1136_v7   ;;  %v1026_v0 = vld [vmem:[%s1545_s0 + $0x10] sm:$0xff] }
 0x205   :  { %787 = vperm.xlu1 %1021, %v1129_v6   ;;  %1023 = vset.pattern.permute.xlu0 %v1071_v27 }
 0x206   :  { %823 = vperm.xlu0 %1023, %v1117_v4   ;;  %v1027_v4 = vld [vmem:[%s1545_s0] sm:$0xff] }
 0x209   :  { %795 = vperm.xlu1 %1021, %v1141_v8  }
 0x20a   :  { %835 = vperm.xlu0 %1023, %v1129_v6   ;;  %v1029_v6 = vld [vmem:[%s1545_s0 + $0x8] sm:$0xff] }
 0x20d   :  { %1022 = vset.pattern.permute.xlu1 %v1071_v27 }
 0x20e   :  { %819 = vperm.xlu1 %1022, %v1105_v1   ;;  %843 = vperm.xlu0 %1023, %v1141_v8   ;;  %v1028_v1 = vld [vmem:[%s1545_s0 + $0x18] sm:$0xff] }
 0x212   :  { %827 = vperm.xlu1 %1022, %v1026_v0   ;;  %1024 = vset.pattern.permute.xlu0 %v1072_v52 }
 0x213   :  { %867 = vperm.xlu0 %1024, %v1027_v4  }
 0x216   :  { %831 = vperm.xlu1 %1022, %v1112_v3   ;;  %v1030_v3 = vld [vmem:[%s1545_s0 + $0x20] sm:$0xff]  ;;  %s1073_s0 = smov 96  }
 0x217   :  { %879 = vperm.xlu0 %1024, %v1028_v1  }
 0x21a   :  { %839 = vperm.xlu1 %1022, %v1124_v5  }
 0x21b   :  { %887 = vperm.xlu0 %1024, %v1124_v5  }
 0x21e   :  { %847 = vperm.xlu1 %1022, %v1136_v7  }
 0x21f   :  { %895 = vperm.xlu0 %1024, %v1136_v7  }
 0x222   :  { %1025 = vset.pattern.permute.xlu1 %v1072_v52 }
 0x223   :  { %871 = vperm.xlu1 %1025, %v1029_v6  }
 0x227   :  { %875 = vperm.xlu1 %1025, %v1026_v0  }
 0x22b   :  { %883 = vperm.xlu1 %1025, %v1030_v3  }
 0x22f   :  { %891 = vperm.xlu1 %1025, %v1141_v8  }
 0x23a   :  { %v690_v5 = vpop.permute.xlu1 %689 }
 0x23b   :  { %714 = vst.msk [vmem:[#allocation2] sm:$0xff] %vm713_vm2, %v690_v5 }
 0x24a   :  { %v692_v24 = vpop.permute.xlu0 %691 }
 0x24b   :  { %715 = vst.msk [vmem:[#allocation2 + $0x8] sm:$0xff] %vm713_vm2, %v692_v24 }
 0x24e   :  { %v694_v7 = vpop.permute.xlu1 %693  ;;  %v696_v29 = vpop.permute.xlu0 %695 }
 0x24f   :  { %716 = vst.msk [vmem:[#allocation2 + $0x10] sm:$0xff] %vm713_vm2, %v694_v7  ;;  %717 = vst.msk [vmem:[#allocation2 + $0x18] sm:$0xff] %vm713_vm2, %v696_v29 }
 0x252   :  { %v698_v20 = vpop.permute.xlu1 %697  ;;  %v700_v31 = vpop.permute.xlu0 %699 }
 0x253   :  { %718 = vst.msk [vmem:[#allocation2 + $0x20] sm:$0xff] %vm713_vm2, %v698_v20  ;;  %719 = vst.msk [vmem:[#allocation2 + $0x28] sm:$0xff] %vm713_vm2, %v700_v31 }
 0x256   :  { %v702_v8 = vpop.permute.xlu1 %701  ;;  %v704_v16 = vpop.permute.xlu0 %703 }
 0x257   :  { %720 = vst.msk [vmem:[#allocation2 + $0x30] sm:$0xff] %vm713_vm2, %v702_v8  ;;  %721 = vst.msk [vmem:[#allocation2 + $0x38] sm:$0xff] %vm713_vm2, %v704_v16 }
 0x267   :  { %v724_v36 = vpop.permute.xlu1 %723  ;;  %v728_v38 = vpop.permute.xlu0 %727 }
 0x268   :  { %v754_v61 = vmul.f32 %v724_v36, %v1214_v39  ;;  %v755_v42 = vmul.f32 %v728_v38, %v1214_v39 }
 0x26a   :  { %v762_v30 = vadd.f32 %v1224_v48, %v754_v61  ;;  %v763_v18 = vadd.f32 %v1224_v48, %v755_v42 }
 0x26b   :  { %v732_v32 = vpop.permute.xlu1 %731  ;;  %v740_v22 = vpop.permute.xlu0 %739 }
 0x26c   :  { %v756_v11 = vmul.f32 %v732_v32, %v1214_v39  ;;  %v758_v4 = vmul.f32 %v740_v22, %v1214_v39 }
 0x26e   :  { %v764_v52 = vadd.f32 %v1224_v48, %v756_v11 }
 0x26f   :  { %v736_v26 = vpop.permute.xlu1 %735  ;;  %v748_v41 = vpop.permute.xlu0 %747 }
 0x270   :  { %v757_v54 = vmul.f32 %v736_v26, %v1214_v39  ;;  %v766_v26 = vadd.f32 %v1224_v48, %v758_v4 }
 0x272   :  { %v765_v59 = vadd.f32 %v1224_v48, %v757_v54 }
 0x273   :  { %v744_v50 = vpop.permute.xlu1 %743 }
 0x274   :  { %v772_v37 = vpop.permute.xlu0 %771  ;;  %v759_v25 = vmul.f32 %v744_v50, %v1214_v39  ;;  %v760_v50 = vmul.f32 %v748_v41, %v1214_v39 }
 0x275   :  { %v802_v49 = vmul.f32 %v772_v37, %v1217_v45 }
 0x276   :  { %v767_v36 = vadd.f32 %v1224_v48, %v759_v25 }
 0x277   :  { %v752_v28 = vpop.permute.xlu1 %751  ;;  %v810_v51 = vadd.f32 %v802_v49, %v762_v30  ;;  %v768_v30 = vadd.f32 %v1224_v48, %v760_v50 }
 0x278   :  { %v784_v56 = vpop.permute.xlu0 %783  ;;  %v761_v29 = vmul.f32 %v752_v28, %v1214_v39 }
 0x279   :  { %v805_v15 = vmul.f32 %v784_v56, %v1217_v45 }
 0x27b   :  { %v813_v1 = vadd.f32 %v805_v15, %v765_v59 }
 0x27c   :  { %v776_v34 = vpop.permute.xlu1 %775  ;;  %v792_v57 = vpop.permute.xlu0 %791 }
 0x27d   :  { %v803_v13 = vmul.f32 %v776_v34, %v1217_v45  ;;  %v807_v3 = vmul.f32 %v792_v57, %v1217_v45 }
 0x27f   :  { %v811_v27 = vadd.f32 %v803_v13, %v763_v18  ;;  %v815_v28 = vadd.f32 %v807_v3, %v767_v36 }
 0x280   :  { %v780_v58 = vpop.permute.xlu1 %779  ;;  %v800_v35 = vpop.permute.xlu0 %799 }
 0x281   :  { %v804_v0 = vmul.f32 %v780_v58, %v1217_v45  ;;  %v809_v37 = vmul.f32 %v800_v35, %v1217_v45 }
 0x283   :  { %v812_v38 = vadd.f32 %v804_v0, %v764_v52 }
 0x284   :  { %v788_v21 = vpop.permute.xlu1 %787 }
 0x285   :  { %v824_v53 = vpop.permute.xlu0 %823  ;;  %v806_v20 = vmul.f32 %v788_v21, %v1217_v45  ;;  %v769_v21 = vadd.f32 %v1224_v48, %v761_v29 }
 0x286   :  { %v851_v33 = vmul.f32 %v824_v53, %v1219_v46 }
 0x287   :  { %v814_v53 = vadd.f32 %v806_v20, %v766_v26 }
 0x288   :  { %v796_v60 = vpop.permute.xlu1 %795  ;;  %v859_v5 = vadd.f32 %v851_v33, %v811_v27 }
 0x289   :  { %v836_v40 = vpop.permute.xlu0 %835  ;;  %v808_v61 = vmul.f32 %v796_v60, %v1217_v45 }
 0x28a   :  { %v854_v34 = vmul.f32 %v836_v40, %v1219_v46  ;;  %v817_v40 = vadd.f32 %v809_v37, %v769_v21 }
 0x28b   :  { %v816_v45 = vadd.f32 %v808_v61, %v768_v30 }
 0x28d   :  { %v820_v62 = vpop.permute.xlu1 %819  ;;  %v1476_v63 = vpop.permute.xlu0 %843 }
 0x28e   :  { %v850_v47 = vmul.f32 %v820_v62, %v1219_v46 }
 0x290   :  { %v858_v43 = vadd.f32 %v850_v47, %v810_v51 }
 0x291   :  { %v828_v9 = vpop.permute.xlu1 %827 }
 0x292   :  { %v868_v23 = vpop.permute.xlu0 %867  ;;  %v852_v24 = vmul.f32 %v828_v9, %v1219_v46  ;;  %v862_v9 = vadd.f32 %v854_v34, %v814_v53 }
 0x293   :  { %v898_v10 = vmul.f32 %v868_v23, %v1232_v55  ;;  %v856_v23 = vmul.f32 %v1476_v63, %v1219_v46 }
 0x294   :  { %v860_v57 = vadd.f32 %v852_v24, %v812_v38 }
 0x295   :  { %v906_v2 = vadd.f32 %v898_v10, %v858_v43  ;;  %v832_v44 = vpop.permute.xlu1 %831 }
 0x296   :  { %v880_v17 = vpop.permute.xlu0 %879  ;;  %v853_v19 = vmul.f32 %v832_v44, %v1219_v46 }
 0x297   :  { %922 = vrot.lane.b32.xlu1 %v906_v2, %s1073_s0  ;;  %v901_v8 = vmul.f32 %v880_v17, %v1232_v55 }
 0x298   :  { %v861_v31 = vadd.f32 %v853_v19, %v813_v1 }
 0x299   :  { %v840_v12 = vpop.permute.xlu1 %839 }
 0x29a   :  { %v888_v16 = vpop.permute.xlu0 %887  ;;  %v855_v32 = vmul.f32 %v840_v12, %v1219_v46  ;;  %v909_v49 = vadd.f32 %v901_v8, %v861_v31  ;;  %v864_v12 = vadd.f32 %v856_v23, %v816_v45 }
 0x29b   :  { %v903_v39 = vmul.f32 %v888_v16, %v1232_v55 }
 0x29c   :  { %v863_v62 = vadd.f32 %v855_v32, %v815_v28 }
 0x29d   :  { %v848_v14 = vpop.permute.xlu1 %847 }
 0x29e   :  { %v857_v41 = vmul.f32 %v848_v14, %v1219_v46  ;;  %v896_v47 = vpop.permute.xlu0 %895  ;;  %v911_v60 = vadd.f32 %v903_v39, %v863_v62 }
 0x29f   :  { %v905_v2 = vmul.f32 %v896_v47, %v1232_v55 }
 0x2a0   :  { %v865_v10 = vadd.f32 %v857_v41, %v817_v40 }
 0x2a2   :  { %v872_v6 = vpop.permute.xlu1 %871  ;;  %v913_v46 = vadd.f32 %v905_v2, %v865_v10 }
 0x2a3   :  { %v899_v7 = vmul.f32 %v872_v6, %v1232_v55 }
 0x2a5   :  { %v907_v22 = vadd.f32 %v899_v7, %v859_v5 }
 0x2a6   :  { %v876_v56 = vpop.permute.xlu1 %875 }
 0x2a7   :  { %v900_v58 = vmul.f32 %v876_v56, %v1232_v55  ;;  %924 = vrot.lane.b32.xlu0 %v907_v22, %s1073_s0 }
 0x2a9   :  { %v908_v35 = vadd.f32 %v900_v58, %v860_v57 }
 0x2aa   :  { %v884_v51 = vpop.permute.xlu1 %883 }
 0x2ab   :  { %v902_v43 = vmul.f32 %v884_v51, %v1232_v55  ;;  %926 = vrot.lane.b32.xlu1 %v908_v35, %s1073_s0  ;;  %928 = vrot.lane.b32.xlu0 %v909_v49, %s1073_s0 }
 0x2ad   :  { %v910_v44 = vadd.f32 %v902_v43, %v862_v9 }
 0x2ae   :  { %v892_v48 = vpop.permute.xlu1 %891 }
 0x2af   :  { %v904_v42 = vmul.f32 %v892_v48, %v1232_v55  ;;  %930 = vrot.lane.b32.xlu1 %v910_v44, %s1073_s0  ;;  %932 = vrot.lane.b32.xlu0 %v911_v60, %s1073_s0 }
 0x2b1   :  { %v912_v63 = vadd.f32 %v904_v42, %v864_v12 }
 0x2b3   :  { %934 = vrot.lane.b32.xlu1 %v912_v63, %s1073_s0  ;;  %936 = vrot.lane.b32.xlu0 %v913_v46, %s1073_s0 }
 0x309   :  { %v923_v54 = vpop.permute.xlu1 %922 }
 0x30a   :  { %947 = vst.msk [vmem:[#allocation2] sm:$0xff] %vm946_vm3, %v923_v54 }
 0x319   :  { %v925_v13 = vpop.permute.xlu0 %924 }
 0x31a   :  { %948 = vst.msk [vmem:[#allocation2 + $0x8] sm:$0xff] %vm946_vm3, %v925_v13 }
 0x31d   :  { %v927_v14 = vpop.permute.xlu1 %926  ;;  %v929_v11 = vpop.permute.xlu0 %928 }
 0x31e   :  { %949 = vst.msk [vmem:[#allocation2 + $0x10] sm:$0xff] %vm946_vm3, %v927_v14  ;;  %950 = vst.msk [vmem:[#allocation2 + $0x18] sm:$0xff] %vm946_vm3, %v929_v11 }
 0x321   :  { %v931_v55 = vpop.permute.xlu1 %930  ;;  %v933_v15 = vpop.permute.xlu0 %932 }
 0x322   :  { %951 = vst.msk [vmem:[#allocation2 + $0x20] sm:$0xff] %vm946_vm3, %v931_v55  ;;  %952 = vst.msk [vmem:[#allocation2 + $0x28] sm:$0xff] %vm946_vm3, %v933_v15 }
 0x325   :  { %v935_v17 = vpop.permute.xlu1 %934  ;;  %v937_v18 = vpop.permute.xlu0 %936 }
 0x326   :  { %953 = vst.msk [vmem:[#allocation2 + $0x30] sm:$0xff] %vm946_vm3, %v935_v17  ;;  %954 = vst.msk [vmem:[#allocation2 + $0x38] sm:$0xff] %vm946_vm3, %v937_v18 }
 0x327   :  { %1042 = shalt.err (!%p1039_p4)
}
 0x328   :  { %s1043_s20 = scalar_lea.hbm %s1548_s3, 1024 }
 0x329   :  { %p1044_p5 = scmp.ne.s32.totalorder %s1548_s3, %s1043_s20  ;;  %p1047_p6 = scmp.lt.u32.totalorder %s1043_s20, %s1548_s3 }
 0x32b   :  { %p1049_p7 = pnand %p1047_p6, %p1044_p5 }
 0x32d   :  { %1052 = shalt.err (!%p1049_p7)
}
 0x32e   :  { %s1075_s25 = smov 128   ;;  %s1076_s26 = smov 8  }
 0x32f   :  { %966 = dma.vmem_to_hbm [thread:$0]  %s961_s16, 1024, %s1548_s3, [#allocation3], %s1075_s25, %s1075_s25, %s1076_s26  }
 0x330   :  { %1053 = dma.done.wait [#allocation3], 1024  }
 0x331   :  { %1054 = vsyncadd [#allocation3], 4294966272 }
 0x332   :  { %970 = vsyncpa [#allocation3], 1 }

</bundles_post_ra>
